<compile_context>
chip_gen: v7x
topology: tpu7x:2x2x1
jax: 0.10.0
libtpu: 0.0.40
codegen_flags: <defaults>
</compile_context>

<pallas_src>
import math

import jax
import jax.numpy as jnp
from jax.experimental import pallas as pl
from jax.experimental.pallas import tpu as pltpu


def _round_up(x, m):
    return ((x + m - 1) // m) * m


def make_label_smoothing_kernel(size, padding_idx, smoothing, tv):
    confidence = 1.0 - smoothing
    fill = smoothing / (size - 2)

    # Closed-form entropy term per non-padding row:
    #   sum_j td*log(td) = confidence*log(confidence) + (size-2)*fill*log(fill)
    # (0*log(0) contributes nothing, matching PyTorch KLDivLoss semantics).
    ent = 0.0
    if confidence > 0.0:
        ent += confidence * math.log(confidence)
    if fill > 0.0:
        ent += (size - 2) * fill * math.log(fill)

    pad_tile = padding_idx // tv      # the single vocab tile holding padding_idx
    pad_local = padding_idx % tv

    def kernel(x_ref, tgt_ref, out_ref, rowsum_ref, tgtval_ref, padcol_ref):
        j = pl.program_id(1)

        @pl.when(j == 0)
        def _init():
            rowsum_ref[...] = jnp.zeros_like(rowsum_ref)
            tgtval_ref[...] = jnp.zeros_like(tgtval_ref)
            padcol_ref[...] = jnp.zeros_like(padcol_ref)

        x = x_ref[...].astype(jnp.float32)          # (tm, tv) f32 compute
        tgt = tgt_ref[...]                          # (tm, 1) int32
        tm_, tv_ = x.shape

        # (a) plain row-sum of x (dominant term; lane reduction rides the XLU).
        rowsum_ref[...] += jnp.sum(x, axis=1, keepdims=True)

        # (b) target-column pick: compare LOCAL lane iota against (tgt - j*tv)
        #     -> one compare + one select + lane reduction per step.
        local_tgt = tgt - j * tv_
        col = jax.lax.broadcasted_iota(jnp.int32, (tm_, tv_), 1)
        tgtval_ref[...] += jnp.sum(
            jnp.where(col == local_tgt, x, 0.0), axis=1, keepdims=True)

        # (c) padding-column value: only in the vocab tile containing it.
        @pl.when(j == pad_tile)
        def _padcol():
            padcol_ref[...] = x_ref[:, pad_local:pad_local + 1].astype(jnp.float32)

        @pl.when(j == pl.num_programs(1) - 1)
        def _finalize():
            # Per-row weights / masking: cheap (tm, 1) ops, only once.
            row_valid = tgt != padding_idx
            conf_row = jnp.where(row_valid, confidence, 0.0).astype(jnp.float32)
            fill_row = jnp.where(row_valid, fill, 0.0).astype(jnp.float32)
            cross = (fill_row * rowsum_ref[...]
                     + (conf_row - fill_row) * tgtval_ref[...]
                     - fill_row * padcol_ref[...])
            n_valid = jnp.sum(row_valid.astype(jnp.float32))
            # KL(sum) = sum td*log(td) - sum td*x
            total = ent * n_valid - jnp.sum(cross)
            # Lane-dense (1, 8, 128) store; wrapper reads [:, 0, 0].
            out_ref[...] = jnp.full(out_ref.shape, total, jnp.float32)

    return kernel


def label_smoothing_loss(x, target, *, size, padding_idx, smoothing,
                         tm=None, tv=None):
    """Sum-reduced KLDivLoss(x, label_smoothed(target)).

    x: (N, size) log-probs (f32 or bf16), target: (N,) int class indices.
    """
    N, V = x.shape
    assert V == size, "x.shape[1] must equal size"

    itemsize = jnp.dtype(x.dtype).itemsize

    # --- Tile selection -------------------------------------------------
    if tv is None:
        tv = min(8192, _round_up(V, 128))
    if tm is None:
        tm = 512 if itemsize <= 2 else 256
        # v7x guard: keep double-buffered x tiles under ~16 MiB
        # (64 MiB physical / 32 MiB scoped per TensorCore).
        while tm > 8 and 2 * tm * tv * itemsize > 16 * 1024 * 1024:
            tm //= 2
        tm = min(tm, _round_up(max(N, 1), 8))
        # v7x dual-TC: ensure >= 2 row tiles whenever rows allow, so the
        # "parallel" row axis actually shards across both cores.
        np_rows = _round_up(max(N, 1), 8)
        if np_rows >= 16 and np_rows <= tm:
            tm = max(8, _round_up((np_rows + 1) // 2, 8))
    assert tm % 8 == 0 and tv % 128 == 0

    Np = _round_up(max(N, 1), tm)
    Vp = _round_up(V, tv)

    xp = x
    if (Np, Vp) != (N, V):
        # Padded columns are zero (-> zero contribution to fill*rowsum);
        # padded rows get a padding_idx target (-> fully masked row).
        xp = jnp.pad(x, ((0, Np - N), (0, Vp - V)))
    tgt2d = target.astype(jnp.int32).reshape(N, 1)
    if Np != N:
        tgt2d = jnp.pad(tgt2d, ((0, Np - N), (0, 0)),
                        constant_values=padding_idx)

    n_row_tiles = Np // tm
    n_vocab_tiles = Vp // tv

    kernel = make_label_smoothing_kernel(size, padding_idx, smoothing, tv)

    # Explicit VMEM budget: enough for double-buffered input tiles plus slack,
    # but never above what v7x can physically supply per TensorCore.
    vmem_limit_bytes = min(48 * 1024 * 1024,
                           max(32 * 1024 * 1024,
                               4 * tm * tv * itemsize + (2 << 20)))

    out = pl.pallas_call(
        kernel,
        out_shape=jax.ShapeDtypeStruct((n_row_tiles, 8, 128), jnp.float32),
        grid_spec=pltpu.PrefetchScalarGridSpec(
            num_scalar_prefetch=0,
            grid=(n_row_tiles, n_vocab_tiles),
            in_specs=[
                pl.BlockSpec((tm, tv), lambda i, j: (i, j)),   # x tile
                pl.BlockSpec((tm, 1), lambda i, j: (i, 0)),    # targets
            ],
            out_specs=pl.BlockSpec((1, 8, 128), lambda i, j: (i, 0, 0)),
            scratch_shapes=[
                pltpu.VMEM((tm, 1), jnp.float32),   # row-sum of x
                pltpu.VMEM((tm, 1), jnp.float32),   # x at target column
                pltpu.VMEM((tm, 1), jnp.float32),   # x at padding column
            ],
        ),
        compiler_params=pltpu.CompilerParams(
            dimension_semantics=("parallel", "arbitrary"),
            vmem_limit_bytes=vmem_limit_bytes,
        ),
    )(xp, tgt2d)

    # Tiny final reduction over per-row-tile partials, done in plain JAX.
    return jnp.sum(out[:, 0, 0])


def _reference(x, target, size, padding_idx, smoothing):
    """Pure-JAX reference mirroring the PyTorch forward exactly."""
    confidence = 1.0 - smoothing
    fill = smoothing / (size - 2)
    N, V = x.shape
    col = jnp.arange(V)[None, :]
    tgt = target[:, None]
    td = jnp.full((N, V), fill, jnp.float32)
    td = jnp.where(col == tgt, confidence, td)
    td = jnp.where(col == padding_idx, 0.0, td)
    td = jnp.where(tgt == padding_idx, 0.0, td)
    safe = jnp.where(td > 0, td, 1.0)
    return jnp.sum(jnp.where(td > 0, td * (jnp.log(safe) - x), 0.0))


if __name__ == "__main__":
    key = jax.random.PRNGKey(0)
    SMOOTHING = 0.1

    # --- Test 1: small shape, f32, single tile, padding_idx = 0 -----------
    PAD1 = 0
    N, SIZE = 8, 32
    k1, k2, k3, k4 = jax.random.split(key, 4)
    logits = jax.random.normal(k1, (N, SIZE), dtype=jnp.float32)
    x = jax.nn.log_softmax(logits, axis=-1)        # KLDivLoss expects log-probs
    target = jax.random.randint(k2, (N,), 0, SIZE, dtype=jnp.int32)
    target = target.at[1].set(PAD1).at[5].set(PAD1)

    loss = label_smoothing_loss(x, target, size=SIZE,
                                padding_idx=PAD1, smoothing=SMOOTHING)
    loss = jax.block_until_ready(loss)
    ref = _reference(x, target, SIZE, PAD1, SMOOTHING)
    assert jnp.allclose(loss, ref, rtol=1e-5, atol=1e-4), (loss, ref)

    # --- Test 2: multi-tile grid (3 row tiles x 4 vocab tiles), pad col 0 --
    PAD2 = 0
    N2, SIZE2 = 24, 512
    logits2 = jax.random.normal(k3, (N2, SIZE2), dtype=jnp.float32)
    x2 = jax.nn.log_softmax(logits2, axis=-1)
    target2 = jax.random.randint(k4, (N2,), 0, SIZE2, dtype=jnp.int32)
    target2 = target2.at[0].set(PAD2).at[7].set(PAD2)

    loss2 = label_smoothing_loss(x2, target2, size=SIZE2,
                                 padding_idx=PAD2, smoothing=SMOOTHING,
                                 tm=8, tv=128)
    loss2 = jax.block_until_ready(loss2)
    ref2 = _reference(x2, target2, SIZE2, PAD2, SMOOTHING)
    assert jnp.allclose(loss2, ref2, rtol=1e-5, atol=1e-4), (loss2, ref2)

    # --- Test 3: padding_idx NOT in vocab tile 0 (exercises pl.when gate) --
    PAD3 = 200
    target3 = target2.at[0].set(PAD3).at[7].set(PAD3)
    loss3 = label_smoothing_loss(x2, target3, size=SIZE2,
                                 padding_idx=PAD3, smoothing=SMOOTHING,
                                 tm=8, tv=128)
    loss3 = jax.block_until_ready(loss3)
    ref3 = _reference(x2, target3, SIZE2, PAD3, SMOOTHING)
    assert jnp.allclose(loss3, ref3, rtol=1e-5, atol=1e-4), (loss3, ref3)

    # --- Test 4: bf16 log-probs, auto tile selection (2 row tiles) --------
    x2_bf16 = x2.astype(jnp.bfloat16)
    loss4 = label_smoothing_loss(x2_bf16, target2, size=SIZE2,
                                 padding_idx=PAD2, smoothing=SMOOTHING)
    loss4 = jax.block_until_ready(loss4)
    ref4 = _reference(x2_bf16.astype(jnp.float32), target2, SIZE2,
                      PAD2, SMOOTHING)
    assert jnp.allclose(loss4, ref4, rtol=2e-4, atol=1e-3), (loss4, ref4)

    # TODO(synk): the PyTorch module also stashes self.true_dist as a side
    # buffer; the kernel never materializes the (N, V) smoothed distribution,
    # so that attribute is intentionally not reproduced.
    print("KERNEL_OK")
</pallas_src>

<mosaic_0001>
module attributes {stable_mosaic.version = 11 : i64} {
  func.func @kernel(%arg0: i32, %arg1: i32, %arg2: memref<8x128xf32, #tpu.memory_space<vmem>>, %arg3: memref<8x1xi32, #tpu.memory_space<vmem>>, %arg4: memref<1x8x128xf32, #tpu.memory_space<vmem>>, %arg5: memref<8x1xf32, #tpu.memory_space<vmem>>, %arg6: memref<8x1xf32, #tpu.memory_space<vmem>>, %arg7: memref<8x1xf32, #tpu.memory_space<vmem>>) attributes {dimension_semantics = [#tpu.dimension_semantics<parallel>, #tpu.dimension_semantics<arbitrary>], iteration_bounds = array<i64: 1, 1>, scalar_prefetch = 0 : i64, scratch_operands = 3 : i64, tpu.core_type = #tpu.core_type<tc>, window_params = [{transform_indices = @transform_0, window_bounds = array<i64: 8, 128>}, {transform_indices = @transform_1, window_bounds = array<i64: 8, 1>}, {transform_indices = @transform_2, window_bounds = array<i64: 1, 8, 128>}]} {
    %c0_i32 = arith.constant 0 : i32
    %0 = arith.cmpi eq, %arg1, %c0_i32 : i32
    %1 = arith.extui %0 : i1 to i32
    %c0_i32_0 = arith.constant 0 : i32
    %2 = arith.cmpi ne, %1, %c0_i32_0 : i32
    scf.if %2 {
      %cst_18 = arith.constant 0.000000e+00 : f32
      %29 = vector.broadcast %cst_18 : f32 to vector<8x1xf32>
      %c0_19 = arith.constant 0 : index
      %c0_20 = arith.constant 0 : index
      %30 = vector.load %arg5[%c0_19, %c0_20] : memref<8x1xf32, #tpu.memory_space<vmem>>, vector<8x1xf32>
      tpu.vector_store %arg5[%c0_19, %c0_20], %29 {strides = array<i32>} : memref<8x1xf32, #tpu.memory_space<vmem>>, vector<8x1xf32>,
      %cst_21 = arith.constant 0.000000e+00 : f32
      %31 = vector.broadcast %cst_21 : f32 to vector<8x1xf32>
      %c0_22 = arith.constant 0 : index
      %c0_23 = arith.constant 0 : index
      %32 = vector.load %arg6[%c0_22, %c0_23] : memref<8x1xf32, #tpu.memory_space<vmem>>, vector<8x1xf32>
      tpu.vector_store %arg6[%c0_22, %c0_23], %31 {strides = array<i32>} : memref<8x1xf32, #tpu.memory_space<vmem>>, vector<8x1xf32>,
      %cst_24 = arith.constant 0.000000e+00 : f32
      %33 = vector.broadcast %cst_24 : f32 to vector<8x1xf32>
      %c0_25 = arith.constant 0 : index
      %c0_26 = arith.constant 0 : index
      %34 = vector.load %arg7[%c0_25, %c0_26] : memref<8x1xf32, #tpu.memory_space<vmem>>, vector<8x1xf32>
      tpu.vector_store %arg7[%c0_25, %c0_26], %33 {strides = array<i32>} : memref<8x1xf32, #tpu.memory_space<vmem>>, vector<8x1xf32>,
    } else {
    }
    %c0 = arith.constant 0 : index
    %c0_1 = arith.constant 0 : index
    %3 = vector.load %arg2[%c0, %c0_1] : memref<8x128xf32, #tpu.memory_space<vmem>>, vector<8x128xf32>
    %c0_2 = arith.constant 0 : index
    %c0_3 = arith.constant 0 : index
    %4 = vector.load %arg3[%c0_2, %c0_3] : memref<8x1xi32, #tpu.memory_space<vmem>>, vector<8x1xi32>
    %c0_4 = arith.constant 0 : index
    %c0_5 = arith.constant 0 : index
    %5 = vector.load %arg5[%c0_4, %c0_5] : memref<8x1xf32, #tpu.memory_space<vmem>>, vector<8x1xf32>
    %cst = arith.constant dense<0.000000e+00> : vector<8xf32>
    %6 = vector.multi_reduction <add>, %3, %cst [1] : vector<8x128xf32> to vector<8xf32>
    %7 = vector.shape_cast %6 : vector<8xf32> to vector<8x1xf32>
    %8 = arith.addf %5, %7 : vector<8x1xf32>
    %c0_6 = arith.constant 0 : index
    %c0_7 = arith.constant 0 : index
    %9 = vector.load %arg5[%c0_6, %c0_7] : memref<8x1xf32, #tpu.memory_space<vmem>>, vector<8x1xf32>
    tpu.vector_store %arg5[%c0_6, %c0_7], %8 {strides = array<i32>} : memref<8x1xf32, #tpu.memory_space<vmem>>, vector<8x1xf32>,
    %c128_i32 = arith.constant 128 : i32
    %10 = arith.muli %arg1, %c128_i32 : i32
    %11 = vector.broadcast %10 : i32 to vector<8x1xi32>
    %12 = arith.subi %4, %11 : vector<8x1xi32>
    %13 = tpu.iota {dimensions = array<i32: 1>} : vector<8x128xi32>
    %c0_8 = arith.constant 0 : index
    %c0_9 = arith.constant 0 : index
    %14 = vector.load %arg6[%c0_8, %c0_9] : memref<8x1xf32, #tpu.memory_space<vmem>>, vector<8x1xf32>
    %15 = vector.broadcast %12 : vector<8x1xi32> to vector<8x128xi32>
    %16 = arith.cmpi eq, %13, %15 : vector<8x128xi32>
    %cst_10 = arith.constant 0.000000e+00 : f32
    %17 = vector.broadcast %cst_10 : f32 to vector<8x128xf32>
    %18 = arith.select %16, %3, %17 : vector<8x128xi1>, vector<8x128xf32>
    %cst_11 = arith.constant dense<0.000000e+00> : vector<8xf32>
    %19 = vector.multi_reduction <add>, %18, %cst_11 [1] : vector<8x128xf32> to vector<8xf32>
    %20 = vector.shape_cast %19 : vector<8xf32> to vector<8x1xf32>
    %21 = arith.addf %14, %20 : vector<8x1xf32>
    %c0_12 = arith.constant 0 : index
    %c0_13 = arith.constant 0 : index
    %22 = vector.load %arg6[%c0_12, %c0_13] : memref<8x1xf32, #tpu.memory_space<vmem>>, vector<8x1xf32>
    tpu.vector_store %arg6[%c0_12, %c0_13], %21 {strides = array<i32>} : memref<8x1xf32, #tpu.memory_space<vmem>>, vector<8x1xf32>,
    %c0_i32_14 = arith.constant 0 : i32
    %23 = arith.cmpi eq, %arg1, %c0_i32_14 : i32
    %24 = arith.extui %23 : i1 to i32
    %c0_i32_15 = arith.constant 0 : i32
    %25 = arith.cmpi ne, %24, %c0_i32_15 : i32
    scf.if %25 {
      %c0_18 = arith.constant 0 : index
      %c0_19 = arith.constant 0 : index
      %29 = vector.load %arg2[%c0_18, %c0_19] : memref<8x128xf32, #tpu.memory_space<vmem>>, vector<8x1xf32>
      %c0_20 = arith.constant 0 : index
      %c0_21 = arith.constant 0 : index
      %30 = vector.load %arg7[%c0_20, %c0_21] : memref<8x1xf32, #tpu.memory_space<vmem>>, vector<8x1xf32>
      tpu.vector_store %arg7[%c0_20, %c0_21], %29 {strides = array<i32>} : memref<8x1xf32, #tpu.memory_space<vmem>>, vector<8x1xf32>,
    } else {
    }
    %c0_i32_16 = arith.constant 0 : i32
    %26 = arith.cmpi eq, %arg1, %c0_i32_16 : i32
    %27 = arith.extui %26 : i1 to i32
    %c0_i32_17 = arith.constant 0 : i32
    %28 = arith.cmpi ne, %27, %c0_i32_17 : i32
    scf.if %28 {
      %c0_i32_18 = arith.constant 0 : i32
      %29 = vector.broadcast %c0_i32_18 : i32 to vector<8x1xi32>
      %30 = arith.cmpi ne, %4, %29 : vector<8x1xi32>
      %cst_19 = arith.constant 0.899999976 : f32
      %cst_20 = arith.constant 0.000000e+00 : f32
      %31 = vector.broadcast %cst_19 : f32 to vector<8x1xf32>
      %32 = vector.broadcast %cst_20 : f32 to vector<8x1xf32>
      %33 = arith.select %30, %31, %32 : vector<8x1xi1>, vector<8x1xf32>
      %cst_21 = arith.constant 0.00333333341 : f32
      %cst_22 = arith.constant 0.000000e+00 : f32
      %34 = vector.broadcast %cst_21 : f32 to vector<8x1xf32>
      %35 = vector.broadcast %cst_22 : f32 to vector<8x1xf32>
      %36 = arith.select %30, %34, %35 : vector<8x1xi1>, vector<8x1xf32>
      %c0_23 = arith.constant 0 : index
      %c0_24 = arith.constant 0 : index
      %37 = vector.load %arg5[%c0_23, %c0_24] : memref<8x1xf32, #tpu.memory_space<vmem>>, vector<8x1xf32>
      %38 = arith.mulf %36, %37 : vector<8x1xf32>
      %39 = arith.subf %33, %36 : vector<8x1xf32>
      %c0_25 = arith.constant 0 : index
      %c0_26 = arith.constant 0 : index
      %40 = vector.load %arg6[%c0_25, %c0_26] : memref<8x1xf32, #tpu.memory_space<vmem>>, vector<8x1xf32>
      %41 = arith.mulf %39, %40 : vector<8x1xf32>
      %42 = arith.addf %38, %41 : vector<8x1xf32>
      %c0_27 = arith.constant 0 : index
      %c0_28 = arith.constant 0 : index
      %43 = vector.load %arg7[%c0_27, %c0_28] : memref<8x1xf32, #tpu.memory_space<vmem>>, vector<8x1xf32>
      %44 = arith.mulf %36, %43 : vector<8x1xf32>
      %45 = arith.subf %42, %44 : vector<8x1xf32>
      %46 = arith.extui %30 : vector<8x1xi1> to vector<8x1xi32>
      %47 = arith.sitofp %46 : vector<8x1xi32> to vector<8x1xf32>
      %48 = vector.shape_cast %47 : vector<8x1xf32> to vector<1x8x1xf32>
      %cst_29 = arith.constant dense<0.000000e+00> : vector<1xf32>
      %49 = vector.multi_reduction <add>, %48, %cst_29 [1, 2] : vector<1x8x1xf32> to vector<1xf32>
      %50 = vector.shape_cast %49 : vector<1xf32> to vector<1x1x1xf32>
      %51 = vector.extract %50[0, 0, 0] : f32 from vector<1x1x1xf32>
      %cst_30 = arith.constant -0.665202737 : f32
      %52 = arith.mulf %cst_30, %51 : f32
      %53 = vector.shape_cast %45 : vector<8x1xf32> to vector<1x8x1xf32>
      %cst_31 = arith.constant dense<0.000000e+00> : vector<1xf32>
      %54 = vector.multi_reduction <add>, %53, %cst_31 [1, 2] : vector<1x8x1xf32> to vector<1xf32>
      %55 = vector.shape_cast %54 : vector<1xf32> to vector<1x1x1xf32>
      %56 = vector.extract %55[0, 0, 0] : f32 from vector<1x1x1xf32>
      %57 = arith.subf %52, %56 : f32
      %58 = vector.broadcast %57 : f32 to vector<1x8x128xf32>
      %c0_32 = arith.constant 0 : index
      %c0_33 = arith.constant 0 : index
      %c0_34 = arith.constant 0 : index
      %59 = vector.load %arg4[%c0_32, %c0_33, %c0_34] : memref<1x8x128xf32, #tpu.memory_space<vmem>>, vector<1x8x128xf32>
      tpu.vector_store %arg4[%c0_32, %c0_33, %c0_34], %58 {strides = array<i32>} : memref<1x8x128xf32, #tpu.memory_space<vmem>>, vector<1x8x128xf32>,
    } else {
    }
    return
  }
  func.func @transform_0(%arg0: i32, %arg1: i32) -> (i32, i32) {
    %c0_i32 = arith.constant 0 : i32
    return %arg0, %arg1 : i32, i32
  }
  func.func @transform_1(%arg0: i32, %arg1: i32) -> (i32, i32) {
    %c0_i32 = arith.constant 0 : i32
    %c0_i32_0 = arith.constant 0 : i32
    return %arg0, %c0_i32 : i32, i32
  }
  func.func @transform_2(%arg0: i32, %arg1: i32) -> (i32, i32, i32) {
    %c0_i32 = arith.constant 0 : i32
    %c0_i32_0 = arith.constant 0 : i32
    %c0_i32_1 = arith.constant 0 : i32
    return %arg0, %c0_i32, %c0_i32_0 : i32, i32, i32
  }
}

</mosaic_0001>

<bundles_post_ra>
// kernel: tpu_custom_call.1
= control target key start
LH: loop header
LB: loop body
LE: loop exit
PB: predicated region body
PF: predicated region fallthrough
CT: control target
= control target key end

     0   :  { %s177_s0 = inlined_call_operand.vmem [shape: f32[8,128], index: 0, kind: input, shape index: {}]   ;;  %s178_s1 = inlined_call_operand.vmem [shape: s32[8,1], index: 1, kind: input, shape index: {}]   ;;  %s179_s2 = inlined_call_operand.hbm [shape: f32[1,8,128], index: 2, kind: output, shape index: {}]  }
   0x1   :  { %v21_v0 = vld [vmem:[%s178_s1] sm:$0xff] }
   0x2   :  { %7 = vsyncpa [#allocation6], 0  ;;  %v133_v1 = vmov 0   ;;  %v20_v2 = vld [vmem:[%s177_s0] sm:$0xff]  ;;  %vm16_vm0 = vcmask 7168   ;;  %v134_v3 = vmov 0.0   ;;  %v31_v4 = vlaneseq }
   0x3   :  { %108 = vset.pattern.permute.xlu0 %v133_v1  ;;  %17 = vst.msk [vmem:[#allocation2] sm:$0xff] %vm16_vm0, %v134_v3  ;;  %19 = vst.msk [vmem:[#allocation4] sm:$0xff] %vm16_vm0, %v134_v3  ;;  %vm48_vm2 = vcmp.ne.s32.totalorder %v21_v0, 0  ;;  %s135_s13 = smov [#allocation5]  }
   0x4   :  { %35 = vperm.xlu0 %108, %v21_v0   ;;  %18 = vst.msk [vmem:[#allocation3] sm:$0xff] %vm16_vm0, %v134_v3  ;;  %47 = vst.msk [vmem:[#allocation4] sm:$0xff] %vm16_vm0, %v20_v2  ;;  %v32_v5 = vand.u32 127, %v31_v4  ;;  %v100_v8 = vsel %vm48_vm2, 1.0, %v134_v3  ;;  %v49_v16 = vsel %vm48_vm2, 0.9, %v134_v3 }
   0x5   :  { %v62_v9 = vsel %vm16_vm0, %v100_v8, 0.0  ;;  %v50_v17 = vsel %vm48_vm2, 0.0033333334, %v134_v3  ;;  %s92_s14 = sshll.u32 %s135_s13, 4  ;;  %s93_s14 = int_to_ptr.vmem [resolvable:$true] %s92_s14 }
   0x6   :  { %v53_v19 = vsub.f32 %v49_v16, %v50_v17  ;;  %s109_s17 = scalar_lea.vmem %s93_s14, 128  ;;  %p114_p1 = scmp.lt.s32.totalorder %s93_s14, %s93_s14 }
   0x7   :  { %p110_p0 = scmp.ne.s32.totalorder %s93_s14, %s109_s17  ;;  %p115_p2 = scmp.lt.s32.totalorder %s109_s17, %s109_s17 }
   0x9   :  { %p116_p3 = por %p115_p2, %p114_p1 }
   0xa   :  { %v22_v10 = vld [vmem:[#allocation2] sm:$0xff] }
   0xb   :  { %v33_v13 = vld [vmem:[#allocation3] sm:$0xff]  ;;  %v57_v20 = vld [vmem:[#allocation4] sm:$0xff]  ;;  %p117_p4 = pnand %p116_p3, %p110_p0 }
   0xc   :  { %v58_v24 = vmul.f32 %v57_v20, %v50_v17 }
  0x23   :  { %23 = vadd.xlane.f32.xlu0 %v20_v2 }
  0x83   :  { %v36_v6 = vpop.permute.xlu0 %35 }
  0x84   :  { %vm37_vm1 = vcmp.eq.s32.totalorder %v32_v5, %v36_v6 }
  0x85   :  { %v38_v7 = vsel %vm37_vm1, %v20_v2, 0.0 }
  0x86   :  { %39 = vadd.xlane.f32.xlu1 %v38_v7 }
  0x8a   :  { %63 = vadd.xlane.f32.xlu1 %v62_v9 }
  0xb0   :  { %v24_v11 = vpop.xlane.xlu0 %23 }
  0xb1   :  { %v25_v12 = vadd.f32 %v24_v11, %v22_v10 }
  0xb3   :  { %27 = vst.msk [vmem:[#allocation2] sm:$0xff] %vm16_vm0, %v25_v12 }
  0xba   :  { %v51_v18 = vld [vmem:[#allocation2] sm:$0xff] }
  0xbb   :  { %v52_v21 = vmul.f32 %v51_v18, %v50_v17 }
 0x113   :  { %v40_v14 = vpop.xlane.xlu1 %39 }
 0x114   :  { %v41_v15 = vadd.f32 %v40_v14, %v33_v13 }
 0x116   :  { %42 = vst.msk [vmem:[#allocation3] sm:$0xff] %vm16_vm0, %v41_v15 }
 0x117   :  { %v64_v28 = vpop.xlane.xlu1 %63 }
 0x118   :  { %v65_v29 = vrot.slane %v64_v28, 4 }
 0x11a   :  { %v66_v30 = vadd.f32 %v65_v29, %v64_v28 }
 0x11c   :  { %v67_v31 = vrot.slane %v66_v30, 2 }
 0x11d   :  { %v54_v22 = vld [vmem:[#allocation3] sm:$0xff] }
 0x11e   :  { %v55_v23 = vmul.f32 %v54_v22, %v53_v19  ;;  %v68_v32 = vadd.f32 %v67_v31, %v66_v30 }
 0x120   :  { %v56_v25 = vadd.f32 %v55_v23, %v52_v21  ;;  %v69_v33 = vrot.slane %v68_v32, 1 }
 0x122   :  { %v59_v26 = vsub.f32 %v56_v25, %v58_v24  ;;  %v70_v34 = vadd.f32 %v69_v33, %v68_v32 }
 0x124   :  { %v73_v27 = vsel %vm16_vm0, %v59_v26, 0.0  ;;  %101 = vpush %v70_v34 }
 0x125   :  { %74 = vadd.xlane.f32.xlu1 %v73_v27 }
 0x155   :  { %s102_s0 = spop %101 }
 0x156   :  { %s72_s1 = smul.f32 -0.66520274, %s102_s0 }
 0x1b2   :  { %v75_v35 = vpop.xlane.xlu1 %74 }
 0x1b3   :  { %v76_v36 = vrot.slane %v75_v35, 4 }
 0x1b5   :  { %v77_v37 = vadd.f32 %v76_v36, %v75_v35 }
 0x1b7   :  { %v78_v38 = vrot.slane %v77_v37, 2 }
 0x1b9   :  { %v79_v39 = vadd.f32 %v78_v38, %v77_v37 }
 0x1bb   :  { %v80_v40 = vrot.slane %v79_v39, 1 }
 0x1bd   :  { %v81_v41 = vadd.f32 %v80_v40, %v79_v39 }
 0x1bf   :  { %103 = vpush %v81_v41 }
 0x1f0   :  { %s104_s15 = spop %103 }
 0x1f1   :  { %s83_s16 = ssub.f32 %s72_s1, %s104_s15 }
 0x1f3   :  { %v84_v42 = vstv %s83_s16 }
 0x1f4   :  { %85 = vst [vmem:[#allocation5] sm:$0xff] %v84_v42 }
 0x1f5   :  { %120 = shalt.err (!%p117_p4)
}
 0x1f6   :  { %s121_s20 = scalar_lea.hbm %s179_s2, 128 }
 0x1f7   :  { %p122_p5 = scmp.ne.s32.totalorder %s179_s2, %s121_s20  ;;  %p125_p6 = scmp.lt.u32.totalorder %s121_s20, %s179_s2 }
 0x1f9   :  { %p127_p7 = pnand %p125_p6, %p122_p5 }
 0x1fb   :  { %130 = shalt.err (!%p127_p7)
}
 0x1fc   :  { %95 = dma.vmem_to_hbm [thread:$0]  %s93_s14, 128, %s179_s2, [#allocation6]  }
 0x1fd   :  { %131 = dma.done.wait [#allocation6], 128  }
 0x1fe   :  { %132 = vsyncadd [#allocation6], 4294967168 }
 0x1ff   :  { %99 = vsyncpa [#allocation6], 1 }

</bundles_post_ra>
